<compile_context>
chip_gen: v7x
topology: tpu7x:2x2x1
jax: 0.10.0
libtpu: 0.0.40
codegen_flags: <defaults>
</compile_context>

<pallas_src>
import math
import functools
import numpy as np
import jax
import jax.numpy as jnp
from jax.experimental import pallas as pl
from jax.experimental.pallas import tpu as pltpu


# ----------------------------------------------------------------------------
# Pallas kernels
# ----------------------------------------------------------------------------
def _decode_kernel(out_ref, grid_ref, anch_ref, pred_ref):
    # out_ref  : (5, HW)      raw network output for one (b, a) pair
    # grid_ref : (2, HW)      [grid_x, grid_y] as f32 (precomputed, resident)
    # anch_ref : SMEM (2*nBA,) flat [aw, ah] per (b, a) row
    # pred_ref : (4, HW)      predicted boxes (px, py, pw, ph)
    i = pl.program_id(0)
    aw = anch_ref[2 * i]
    ah = anch_ref[2 * i + 1]

    gx = grid_ref[0, :]
    gy = grid_ref[1, :]

    pred_ref[0, :] = jax.nn.sigmoid(out_ref[0]) + gx
    pred_ref[1, :] = jax.nn.sigmoid(out_ref[1]) + gy
    pred_ref[2, :] = jnp.exp(out_ref[2]) * aw
    pred_ref[3, :] = jnp.exp(out_ref[3]) * ah
    # NOTE: conf channel (out_ref[4]) intentionally unused here; a 4-channel
    # block of a 5-channel axis is not expressible with aligned BlockSpecs,
    # so the extra channel rides along in the (already tiny) DMA.


def _loss_kernel(out_ref, tgt_ref, part_ref, *, coord_scale):
    # out_ref : (5, HW)  raw network output for one (b, a) pair
    # tgt_ref : (7, HW)  [tx, ty, tw, th, tconf, coord_mask, conf_mask]
    # part_ref: (1, 1)   per-(b, a) partial loss
    x = jax.nn.sigmoid(out_ref[0])
    y = jax.nn.sigmoid(out_ref[1])
    w = out_ref[2]
    h = out_ref[3]
    conf = jax.nn.sigmoid(out_ref[4])

    t = tgt_ref[...]
    tx, ty, tw, th, tconf = t[0], t[1], t[2], t[3], t[4]
    cm = t[5]                       # coord_mask (0/1)
    cfm = t[6]                      # conf_mask  (sqrt removed algebraically)

    dx = (x - tx) * cm
    dy = (y - ty) * cm
    dw = (w - tw) * cm
    dh = (h - th) * cm
    dc = conf - tconf

    sq = coord_scale * (dx * dx + dy * dy + dw * dw + dh * dh) + dc * dc * cfm
    part_ref[0, 0] = 0.5 * jnp.sum(sq)


# ----------------------------------------------------------------------------
# Pallas wrappers (jitted)
# ----------------------------------------------------------------------------
@jax.jit
def pallas_decode(output, anchors_wh):
    """output: (nB, nA*5, nH, nW) NCHW; anchors_wh: (nA, 2).
    Returns pred boxes of shape (nB*nA, 4, nH*nW)."""
    nB, C, nH, nW = output.shape
    nA = anchors_wh.shape[0]
    HW = nH * nW
    nBA = nB * nA

    # free contiguous view -- no transpose, no extra HBM pass
    out5 = output.reshape(nBA, 5, HW)

    # grid coordinates precomputed as f32 (no in-kernel int mod/div)
    gx = jnp.tile(jnp.arange(nW, dtype=jnp.float32), nH)
    gy = jnp.repeat(jnp.arange(nH, dtype=jnp.float32), nW)
    grid_xy = jnp.stack([gx, gy], axis=0)                       # (2, HW)

    # flat anchors per (b, a) row, lives in SMEM inside the kernel
    anchors_flat = jnp.tile(anchors_wh.astype(jnp.float32), (nB, 1)).reshape(-1)

    pred = pl.pallas_call(
        _decode_kernel,
        grid=(nBA,),
        in_specs=[
            pl.BlockSpec((None, 5, HW), lambda i: (i, 0, 0)),
            pl.BlockSpec((2, HW), lambda i: (0, 0)),
            pl.BlockSpec(memory_space=pltpu.MemorySpace.SMEM),
        ],
        out_specs=pl.BlockSpec((None, 4, HW), lambda i: (i, 0, 0)),
        out_shape=jax.ShapeDtypeStruct((nBA, 4, HW), jnp.float32),
        compiler_params=pltpu.CompilerParams(
            dimension_semantics=("parallel",)),
    )(out5, grid_xy, anchors_flat)
    return pred


@functools.partial(jax.jit, static_argnames=("coord_scale",))
def pallas_region_loss(output, tgt, *, coord_scale):
    """output: (nB, nA*5, nH, nW) raw net output; tgt: (nB*nA, 7, HW)."""
    nB, C, nH, nW = output.shape
    HW = nH * nW
    nBA = tgt.shape[0]

    out5 = output.reshape(nBA, 5, HW)          # free view, shared with decode

    partials = pl.pallas_call(
        functools.partial(_loss_kernel, coord_scale=float(coord_scale)),
        grid=(nBA,),
        in_specs=[
            pl.BlockSpec((None, 5, HW), lambda i: (i, 0, 0)),
            pl.BlockSpec((None, 7, HW), lambda i: (i, 0, 0)),
        ],
        out_specs=pl.BlockSpec((None, 1, 1), lambda i: (i, 0, 0)),
        out_shape=jax.ShapeDtypeStruct((nBA, 1, 1), jnp.float32),
        compiler_params=pltpu.CompilerParams(
            dimension_semantics=("parallel",)),
    )(out5, tgt)
    return jnp.sum(partials)


# ----------------------------------------------------------------------------
# Host-side build_targets (faithful numpy port of the PyTorch reference)
# ----------------------------------------------------------------------------
def _bbox_ious_np(boxes1, boxes2):
    # boxes: (4, N), format (cx, cy, w, h), x1y1x2y2=False path
    mx = np.minimum(boxes1[0] - boxes1[2] / 2.0, boxes2[0] - boxes2[2] / 2.0)
    Mx = np.maximum(boxes1[0] + boxes1[2] / 2.0, boxes2[0] + boxes2[2] / 2.0)
    my = np.minimum(boxes1[1] - boxes1[3] / 2.0, boxes2[1] - boxes2[3] / 2.0)
    My = np.maximum(boxes1[1] + boxes1[3] / 2.0, boxes2[1] + boxes2[3] / 2.0)
    w1, h1 = boxes1[2], boxes1[3]
    w2, h2 = boxes2[2], boxes2[3]
    uw, uh = Mx - mx, My - my
    cw, ch = w1 + w2 - uw, h1 + h2 - uh
    mask = (cw <= 0) | (ch <= 0)
    area1, area2 = w1 * h1, w2 * h2
    carea = cw * ch
    carea = np.where(mask, 0.0, carea)
    uarea = area1 + area2 - carea
    return carea / uarea


def _bbox_iou_np(box1, box2):
    mx = min(box1[0] - box1[2] / 2.0, box2[0] - box2[2] / 2.0)
    Mx = max(box1[0] + box1[2] / 2.0, box2[0] + box2[2] / 2.0)
    my = min(box1[1] - box1[3] / 2.0, box2[1] - box2[3] / 2.0)
    My = max(box1[1] + box1[3] / 2.0, box2[1] + box2[3] / 2.0)
    w1, h1 = box1[2], box1[3]
    w2, h2 = box2[2], box2[3]
    uw, uh = Mx - mx, My - my
    cw, ch = w1 + w2 - uw, h1 + h2 - uh
    if cw <= 0 or ch <= 0:
        return 0.0
    area1, area2 = w1 * h1, w2 * h2
    carea = cw * ch
    uarea = area1 + area2 - carea
    return carea / uarea


def build_targets_np(pred_boxes, target, anchors, num_anchors, nH, nW,
                     noobject_scale, object_scale, sil_thresh, seen):
    # TODO(synk): data-dependent per-GT scalar loops have no clean Pallas form;
    #             kept on host exactly as in the PyTorch reference.
    #             (`seen` accepted but unused -- same as the reference spec.)
    nB = target.shape[0]
    nA = num_anchors
    anchor_step = int(len(anchors) / num_anchors)
    conf_mask = np.ones((nB, nA, nH, nW), np.float32) * noobject_scale
    coord_mask = np.zeros((nB, nA, nH, nW), np.float32)
    tx = np.zeros((nB, nA, nH, nW), np.float32)
    ty = np.zeros((nB, nA, nH, nW), np.float32)
    tw = np.zeros((nB, nA, nH, nW), np.float32)
    th = np.zeros((nB, nA, nH, nW), np.float32)
    tconf = np.zeros((nB, nA, nH, nW), np.float32)
    nAnchors = nA * nH * nW
    nPixels = nH * nW
    nGT = 0
    nCorrect = 0

    for b in range(nB):
        cur_pred_boxes = pred_boxes[b * nAnchors:(b + 1) * nAnchors].T  # (4, nAnchors)
        cur_ious = np.zeros(nAnchors, np.float32)
        for t in range(50):
            if target[b][t * 5 + 1] == 0:
                break
            gx = float(target[b][t * 5 + 1]) * nW
            gy = float(target[b][t * 5 + 2]) * nH
            gw = float(target[b][t * 5 + 3]) * nW
            gh = float(target[b][t * 5 + 4]) * nH
            cur_gt_boxes = np.tile(np.array([gx, gy, gw, gh], np.float32)[:, None],
                                   (1, nAnchors))
            cur_ious = np.maximum(cur_ious, _bbox_ious_np(cur_pred_boxes, cur_gt_boxes))
        cur_ious = cur_ious.reshape(nA, nH, nW)
        conf_mask[b][cur_ious > sil_thresh] = 0

    for b in range(nB):
        for t in range(50):
            if target[b][t * 5 + 1] == 0:
                break
            nGT += 1
            best_iou = 0.0
            best_n = -1
            min_dist = 10000
            gx = float(target[b][t * 5 + 1]) * nW
            gy = float(target[b][t * 5 + 2]) * nH
            # guard against the reference's OOB when a normalized coord == 1.0
            gi = min(int(gx), nW - 1)
            gj = min(int(gy), nH - 1)
            gw = float(target[b][t * 5 + 3]) * nW
            gh = float(target[b][t * 5 + 4]) * nH
            gt_box = [0, 0, gw, gh]
            for n in range(nA):
                aw = anchors[anchor_step * n]
                ah = anchors[anchor_step * n + 1]
                anchor_box = [0, 0, aw, ah]
                iou = _bbox_iou_np(anchor_box, gt_box)
                if anchor_step == 4:
                    ax = anchors[anchor_step * n + 2]
                    ay = anchors[anchor_step * n + 3]
                    dist = (gi + ax - gx) ** 2 + (gj + ay - gy) ** 2
                if iou > best_iou:
                    best_iou = iou
                    best_n = n
                elif anchor_step == 4 and iou == best_iou and dist < min_dist:
                    best_iou = iou
                    best_n = n
                    min_dist = dist
            gt_box = [gx, gy, gw, gh]
            pred_box = pred_boxes[b * nAnchors + best_n * nPixels + gj * nW + gi]
            coord_mask[b][best_n][gj][gi] = 1
            conf_mask[b][best_n][gj][gi] = object_scale
            tx[b][best_n][gj][gi] = float(target[b][t * 5 + 1]) * nW - gi
            ty[b][best_n][gj][gi] = float(target[b][t * 5 + 2]) * nH - gj
            tw[b][best_n][gj][gi] = math.log(gw / anchors[anchor_step * best_n])
            th[b][best_n][gj][gi] = math.log(gh / anchors[anchor_step * best_n + 1])
            iou = _bbox_iou_np(gt_box, pred_box)
            tconf[b][best_n][gj][gi] = iou
            if iou > 0.5:
                nCorrect += 1
    return nGT, nCorrect, coord_mask, conf_mask, tx, ty, tw, th, tconf


# ----------------------------------------------------------------------------
# RegionLoss module equivalent
# ----------------------------------------------------------------------------
class RegionLossPallas:
    def __init__(self, anchors=(), num_anchors=1):
        self.anchors = list(anchors)
        self.num_anchors = num_anchors
        self.anchor_step = int(len(self.anchors) / num_anchors)
        self.coord_scale = 1
        self.noobject_scale = 1
        self.object_scale = 5
        self.thresh = 0.6
        self.seen = 0

    def forward(self, output, target):
        output = jnp.asarray(output, dtype=jnp.float32)
        nB, C, nH, nW = output.shape
        nA = self.num_anchors
        assert C == nA * 5
        HW = nH * nW
        nBA = nB * nA

        anchors_wh = (jnp.asarray(self.anchors, dtype=jnp.float32)
                      .reshape(nA, self.anchor_step)[:, :2])

        # Pallas decode: activations + predicted boxes, (nBA, 4, HW)
        pred = pallas_decode(output, anchors_wh)

        # single device->host transfer; rows flatten (b, a, j, i), cols (x,y,w,h)
        pred_np = np.asarray(pred)
        pred_boxes = pred_np.transpose(0, 2, 1).reshape(-1, 4)

        (nGT, nCorrect, coord_mask, conf_mask,
         tx, ty, tw_t, th_t, tconf) = build_targets_np(
            pred_boxes, np.asarray(target), self.anchors, nA, nH, nW,
            self.noobject_scale, self.object_scale, self.thresh, self.seen)

        # single host->device upload of all targets/masks: (nBA, 7, HW)
        tgt = np.stack([tx, ty, tw_t, th_t, tconf, coord_mask, conf_mask],
                       axis=2).reshape(nBA, 7, HW).astype(np.float32)
        tgt = jnp.asarray(tgt)

        total_loss = pallas_region_loss(output, tgt,
                                        coord_scale=float(self.coord_scale))
        return total_loss


# ----------------------------------------------------------------------------
if __name__ == "__main__":
    key = jax.random.PRNGKey(0)

    nB, nH, nW = 2, 16, 16
    num_anchors = 5
    anchors = [1.0, 1.5, 2.0, 2.5, 3.0, 3.5, 1.5, 2.0, 2.5, 1.0]  # deterministic params

    # network output: NCHW, channels = num_anchors * 5
    output = 0.5 * jax.random.normal(key, (nB, num_anchors * 5, nH, nW),
                                     dtype=jnp.float32)

    # targets: (nB, 50*5) rows of [cls, cx, cy, w, h] (normalized), 0-terminated
    target = np.zeros((nB, 250), dtype=np.float32)
    target[0, 0:5] = [0.0, 0.30, 0.40, 0.20, 0.30]
    target[0, 5:10] = [0.0, 0.70, 0.60, 0.15, 0.25]
    target[1, 0:5] = [0.0, 0.55, 0.25, 0.35, 0.20]

    region_loss = RegionLossPallas(anchors=anchors, num_anchors=num_anchors)
    loss = region_loss.forward(output, target)
    loss = jax.block_until_ready(loss)
    assert np.isfinite(float(loss))
    print("KERNEL_OK")
</pallas_src>

<mosaic_0001>
module attributes {stable_mosaic.version = 11 : i64} {
  func.func @_decode_kernel(%arg0: i32, %arg1: memref<1x5x256xf32, #tpu.memory_space<vmem>>, %arg2: memref<2x256xf32, #tpu.memory_space<vmem>>, %arg3: memref<20xf32, #tpu.memory_space<smem>>, %arg4: memref<1x4x256xf32, #tpu.memory_space<vmem>>) attributes {dimension_semantics = [#tpu.dimension_semantics<parallel>], iteration_bounds = array<i64: 10>, scalar_prefetch = 0 : i64, scratch_operands = 0 : i64, tpu.core_type = #tpu.core_type<tc>, window_params = [{transform_indices = @transform_0, window_bounds = array<i64: 1, 5, 256>}, {pipeline_mode = #tpu.pipeline_mode<synchronous>, transform_indices = @transform_1, window_bounds = array<i64: 2, 256>}, {transform_indices = @transform_2, window_bounds = array<i64: 20>}, {transform_indices = @transform_3, window_bounds = array<i64: 1, 4, 256>}]} {
    %c2_i32 = arith.constant 2 : i32
    %0 = arith.muli %c2_i32, %arg0 : i32
    %1 = arith.index_cast %0 : i32 to index
    %2 = memref.load %arg3[%1] : memref<20xf32, #tpu.memory_space<smem>>
    %c2_i32_0 = arith.constant 2 : i32
    %3 = arith.muli %c2_i32_0, %arg0 : i32
    %c1_i32 = arith.constant 1 : i32
    %4 = arith.addi %3, %c1_i32 : i32
    %5 = arith.index_cast %4 : i32 to index
    %6 = memref.load %arg3[%5] : memref<20xf32, #tpu.memory_space<smem>>
    %c0 = arith.constant 0 : index
    %c0_1 = arith.constant 0 : index
    %7 = vector.load %arg2[%c0, %c0_1] : memref<2x256xf32, #tpu.memory_space<vmem>>, vector<1x256xf32>
    %8 = vector.shape_cast %7 : vector<1x256xf32> to vector<256xf32>
    %c1 = arith.constant 1 : index
    %c0_2 = arith.constant 0 : index
    %9 = vector.load %arg2[%c1, %c0_2] : memref<2x256xf32, #tpu.memory_space<vmem>>, vector<1x256xf32>
    %10 = vector.shape_cast %9 : vector<1x256xf32> to vector<256xf32>
    %c0_3 = arith.constant 0 : index
    %c0_4 = arith.constant 0 : index
    %c0_5 = arith.constant 0 : index
    %11 = vector.load %arg1[%c0_3, %c0_4, %c0_5] : memref<1x5x256xf32, #tpu.memory_space<vmem>>, vector<1x1x256xf32>
    %12 = vector.shape_cast %11 : vector<1x1x256xf32> to vector<256xf32>
    %13 = arith.negf %12 : vector<256xf32>
    %14 = math.exp %13 : vector<256xf32>
    %cst = arith.constant 1.000000e+00 : f32
    %15 = vector.broadcast %cst : f32 to vector<256xf32>
    %16 = arith.addf %15, %14 : vector<256xf32>
    %17 = arith.divf %15, %16 : vector<256xf32>
    %18 = arith.addf %17, %8 : vector<256xf32>
    %c0_6 = arith.constant 0 : index
    %c0_7 = arith.constant 0 : index
    %c0_8 = arith.constant 0 : index
    %19 = vector.load %arg4[%c0_6, %c0_7, %c0_8] : memref<1x4x256xf32, #tpu.memory_space<vmem>>, vector<1x1x256xf32>
    %20 = vector.shape_cast %19 : vector<1x1x256xf32> to vector<256xf32>
    %21 = vector.shape_cast %18 : vector<256xf32> to vector<1x1x256xf32>
    tpu.vector_store %arg4[%c0_6, %c0_7, %c0_8], %21 {strides = array<i32>} : memref<1x4x256xf32, #tpu.memory_space<vmem>>, vector<1x1x256xf32>,
    %c0_9 = arith.constant 0 : index
    %c1_10 = arith.constant 1 : index
    %c0_11 = arith.constant 0 : index
    %22 = vector.load %arg1[%c0_9, %c1_10, %c0_11] : memref<1x5x256xf32, #tpu.memory_space<vmem>>, vector<1x1x256xf32>
    %23 = vector.shape_cast %22 : vector<1x1x256xf32> to vector<256xf32>
    %24 = arith.negf %23 : vector<256xf32>
    %25 = math.exp %24 : vector<256xf32>
    %cst_12 = arith.constant 1.000000e+00 : f32
    %26 = vector.broadcast %cst_12 : f32 to vector<256xf32>
    %27 = arith.addf %26, %25 : vector<256xf32>
    %28 = arith.divf %26, %27 : vector<256xf32>
    %29 = arith.addf %28, %10 : vector<256xf32>
    %c0_13 = arith.constant 0 : index
    %c1_14 = arith.constant 1 : index
    %c0_15 = arith.constant 0 : index
    %30 = vector.load %arg4[%c0_13, %c1_14, %c0_15] : memref<1x4x256xf32, #tpu.memory_space<vmem>>, vector<1x1x256xf32>
    %31 = vector.shape_cast %30 : vector<1x1x256xf32> to vector<256xf32>
    %32 = vector.shape_cast %29 : vector<256xf32> to vector<1x1x256xf32>
    tpu.vector_store %arg4[%c0_13, %c1_14, %c0_15], %32 {strides = array<i32>} : memref<1x4x256xf32, #tpu.memory_space<vmem>>, vector<1x1x256xf32>,
    %c0_16 = arith.constant 0 : index
    %c2 = arith.constant 2 : index
    %c0_17 = arith.constant 0 : index
    %33 = vector.load %arg1[%c0_16, %c2, %c0_17] : memref<1x5x256xf32, #tpu.memory_space<vmem>>, vector<1x1x256xf32>
    %34 = vector.shape_cast %33 : vector<1x1x256xf32> to vector<256xf32>
    %35 = math.exp %34 : vector<256xf32>
    %36 = vector.broadcast %2 : f32 to vector<256xf32>
    %37 = arith.mulf %35, %36 : vector<256xf32>
    %c0_18 = arith.constant 0 : index
    %c2_19 = arith.constant 2 : index
    %c0_20 = arith.constant 0 : index
    %38 = vector.load %arg4[%c0_18, %c2_19, %c0_20] : memref<1x4x256xf32, #tpu.memory_space<vmem>>, vector<1x1x256xf32>
    %39 = vector.shape_cast %38 : vector<1x1x256xf32> to vector<256xf32>
    %40 = vector.shape_cast %37 : vector<256xf32> to vector<1x1x256xf32>
    tpu.vector_store %arg4[%c0_18, %c2_19, %c0_20], %40 {strides = array<i32>} : memref<1x4x256xf32, #tpu.memory_space<vmem>>, vector<1x1x256xf32>,
    %c0_21 = arith.constant 0 : index
    %c3 = arith.constant 3 : index
    %c0_22 = arith.constant 0 : index
    %41 = vector.load %arg1[%c0_21, %c3, %c0_22] : memref<1x5x256xf32, #tpu.memory_space<vmem>>, vector<1x1x256xf32>
    %42 = vector.shape_cast %41 : vector<1x1x256xf32> to vector<256xf32>
    %43 = math.exp %42 : vector<256xf32>
    %44 = vector.broadcast %6 : f32 to vector<256xf32>
    %45 = arith.mulf %43, %44 : vector<256xf32>
    %c0_23 = arith.constant 0 : index
    %c3_24 = arith.constant 3 : index
    %c0_25 = arith.constant 0 : index
    %46 = vector.load %arg4[%c0_23, %c3_24, %c0_25] : memref<1x4x256xf32, #tpu.memory_space<vmem>>, vector<1x1x256xf32>
    %47 = vector.shape_cast %46 : vector<1x1x256xf32> to vector<256xf32>
    %48 = vector.shape_cast %45 : vector<256xf32> to vector<1x1x256xf32>
    tpu.vector_store %arg4[%c0_23, %c3_24, %c0_25], %48 {strides = array<i32>} : memref<1x4x256xf32, #tpu.memory_space<vmem>>, vector<1x1x256xf32>,
    return
  }
  func.func @transform_0(%arg0: i32) -> (i32, i32, i32) {
    %c0_i32 = arith.constant 0 : i32
    %c0_i32_0 = arith.constant 0 : i32
    %c0_i32_1 = arith.constant 0 : i32
    return %arg0, %c0_i32, %c0_i32_0 : i32, i32, i32
  }
  func.func @transform_1(%arg0: i32) -> (i32, i32) {
    %c0_i32 = arith.constant 0 : i32
    %c0_i32_0 = arith.constant 0 : i32
    %c0_i32_1 = arith.constant 0 : i32
    return %c0_i32, %c0_i32_0 : i32, i32
  }
  func.func @transform_2(%arg0: i32) -> i32 {
    %c0_i32 = arith.constant 0 : i32
    %c0_i32_0 = arith.constant 0 : i32
    return %c0_i32 : i32
  }
  func.func @transform_3(%arg0: i32) -> (i32, i32, i32) {
    %c0_i32 = arith.constant 0 : i32
    %c0_i32_0 = arith.constant 0 : i32
    %c0_i32_1 = arith.constant 0 : i32
    return %arg0, %c0_i32, %c0_i32_0 : i32, i32, i32
  }
}

</mosaic_0001>

<bundles_post_ra>
// kernel: tile.18
= control target key start
LH: loop header
LB: loop body
LE: loop exit
PB: predicated region body
PF: predicated region fallthrough
CT: control target
= control target key end

     0   :  { %s28_s0 = inlined_call_operand.vmem [shape: f32[5,2], index: 0, kind: input, shape index: {}]   ;;  %s29_s1 = inlined_call_operand.vmem [shape: f32[2,5,1,2], index: 1, kind: output, shape index: {}]  }
   0x1   :  { %v4_v0 = vld [vmem:[%s28_s0] sm:$0x1f] }
   0x2   :  { %5 = vst [vmem:[%s29_s1] sm:$0xff] %v4_v0  ;;  %8 = vst [vmem:[%s29_s1 + $0x8] sm:$0xff] %v4_v0 }

// kernel: tile.19
= control target key start
LH: loop header
LB: loop body
LE: loop exit
PB: predicated region body
PF: predicated region fallthrough
CT: control target
= control target key end

     0   :  { %s83_s10 = smov 18   ;;  %s84_s11 = smov 14   ;;  %vm3_vm0 = vcmask 15360   ;;  %vm9_vm1 = vcmask 162960   ;;  %vm15_vm2 = vcmask 146560   ;;  %vm21_vm3 = vcmask 130160   ;;  %s135_s0 = inlined_call_operand.vmem [shape: f32[2,5,1,2], index: 0, kind: input, shape index: {}]   ;;  %s136_s1 = inlined_call_operand.vmem [shape: f32[20], index: 1, kind: output, shape index: {}]  }
   0x1   :  { %v65_v0 = vld [vmem:[%s135_s0 + $0xc] sm:$0x1]   ;;  %v67_v1 = vld [vmem:[%s135_s0 + $0xa] sm:$0x1]   ;;  %v66_v2 = vld [vmem:[%s135_s0 + $0xb] sm:$0x1]  }
   0x2   :  { %7 = vrot.lane.b32.xlu0 %v65_v0, %s83_s10  ;;  %19 = vrot.lane.b32.xlu1 %v67_v1, %s84_s11  ;;  %v68_v3 = vld [vmem:[%s135_s0 + $0x9] sm:$0x1]   ;;  %v2_v4 = vld [vmem:[%s135_s0] sm:$0x1]   ;;  %s85_s18 = smov 16   ;;  %s86_s19 = smov 12  }
   0x3   :  { %v69_v5 = vld [vmem:[%s135_s0 + $0x8] sm:$0x1]   ;;  %v70_v6 = vld [vmem:[%s135_s0 + $0x4] sm:$0x1]   ;;  %4 = vst.msk [vmem:[#allocation0] sm:$0x1] %vm3_vm0, %v2_v4  }
   0x4   :  { %s87_s24 = smov 10   ;;  %s88_s25 = smov 8   ;;  %v71_v7 = vld [vmem:[%s135_s0 + $0x3] sm:$0x1]   ;;  %v72_v8 = vld [vmem:[%s135_s0 + $0x2] sm:$0x1]  }
   0x5   :  { %s89_s30 = smov 6   ;;  %s90_s2 = smov 4   ;;  %v73_v9 = vld [vmem:[%s135_s0 + $0x1] sm:$0x1]   ;;  %vm27_vm4 = vcmask 113760   ;;  %vm33_vm5 = vcmask 97360  }
   0x6   :  { %13 = vrot.lane.b32.xlu0 %v66_v2, %s85_s18  ;;  %25 = vrot.lane.b32.xlu1 %v68_v3, %s86_s19  ;;  %s91_s0 = smov 2   ;;  %vm39_vm6 = vcmask 80960   ;;  %vm45_vm7 = vcmask 64560   ;;  %vm51_vm8 = vcmask 48160   ;;  %vm57_vm9 = vcmask 31760  }
   0xa   :  { %31 = vrot.lane.b32.xlu0 %v69_v5, %s87_s24  ;;  %37 = vrot.lane.b32.xlu1 %v70_v6, %s88_s25 }
   0xe   :  { %43 = vrot.lane.b32.xlu0 %v71_v7, %s89_s30  ;;  %49 = vrot.lane.b32.xlu1 %v72_v8, %s90_s2 }
  0x12   :  { %55 = vrot.lane.b32.xlu0 %v73_v9, %s91_s0 }
  0x74   :  { %v8_v10 = vpop.permute.xlu0 %7   ;;  %v20_v11 = vpop.permute.xlu1 %19  }
  0x75   :  { %10 = vst.msk [vmem:[#allocation0] sm:$0x1] %vm9_vm1, %v8_v10  }
  0x78   :  { %v14_v12 = vpop.permute.xlu0 %13   ;;  %v26_v13 = vpop.permute.xlu1 %25  }
  0x79   :  { %16 = vst.msk [vmem:[#allocation0] sm:$0x1] %vm15_vm2, %v14_v12  }
  0x7a   :  { %22 = vst.msk [vmem:[#allocation0] sm:$0x1] %vm21_vm3, %v20_v11  }
  0x7b   :  { %28 = vst.msk [vmem:[#allocation0] sm:$0x1] %vm27_vm4, %v26_v13  }
  0x7c   :  { %v32_v14 = vpop.permute.xlu0 %31   ;;  %v38_v15 = vpop.permute.xlu1 %37  }
  0x7d   :  { %34 = vst.msk [vmem:[#allocation0] sm:$0x1] %vm33_vm5, %v32_v14  }
  0x7e   :  { %40 = vst.msk [vmem:[#allocation0] sm:$0x1] %vm39_vm6, %v38_v15  }
  0x80   :  { %v44_v16 = vpop.permute.xlu0 %43   ;;  %v50_v17 = vpop.permute.xlu1 %49  }
  0x81   :  { %46 = vst.msk [vmem:[#allocation0] sm:$0x1] %vm45_vm7, %v44_v16  }
  0x82   :  { %52 = vst.msk [vmem:[#allocation0] sm:$0x1] %vm51_vm8, %v50_v17  }
  0x84   :  { %v56_v18 = vpop.permute.xlu0 %55  }
  0x85   :  { %58 = vst.msk [vmem:[#allocation0] sm:$0x1] %vm57_vm9, %v56_v18  }
  0x8c   :  { %v62_v19 = vld [vmem:[#allocation0] sm:$0x1] }
  0x8d   :  { %64 = vst [vmem:[%s136_s1] sm:$0x1] %v62_v19 }

// kernel: pallas_decode.1
= control target key start
LH: loop header
LB: loop body
LE: loop exit
PB: predicated region body
PF: predicated region fallthrough
CT: control target
= control target key end

     0   :  { %8 = vsyncpa [#allocation4], 0  ;;  %s650_s0 = inlined_call_operand.vmem [shape: f32[10,5,256], index: 0, kind: input, shape index: {}]   ;;  %s651_s1 = inlined_call_operand.vmem [shape: f32[2,256], index: 1, kind: input, shape index: {}]   ;;  %s652_s2 = inlined_call_operand.vmem [shape: f32[20], index: 2, kind: input, shape index: {}]   ;;  %s653_s3 = inlined_call_operand.hbm [shape: f32[10,4,256], index: 3, kind: output, shape index: {}]  }
   0x1   :  { %9 = vsyncpa [#allocation3], 0 }
   0x2   :  { %11 = vsyncpa [#allocation3 + $0x1], 0  ;;  %s509_s12 = smov 0   ;;  %s511_s13 = smov 0  }
   0x3   :  { %s513_s14 = smov 0   ;;  %s515_s15 = smov 0  }
   0x4 LB: > { %s530_s16 = sadd.s32 4294967295, %s485_s15   ;;  %s316_s17 = sadd.s32 4294967294, %s485_s15   ;;  %s485_s15 = sphi %s515_s15, %s662_s15   ;;  %s481_s14 = sphi %s513_s14, %s661_s14   ;;  %s477_s13 = sphi %s511_s13, %s660_s13   ;;  %s473_s12 = sphi %s509_s12, %s659_s12  }
   0x5   : > { %s534_s18 = sadd.s32 1, %s485_s15   ;;  %s92_s19 = sadd.s32 1, %s481_s14 }
   0x6   : > { %s89_s20 = ssub.s32 %s485_s15, %s534_s18  ;;  %p102_p0 = scmp.ne.s32.totalorder %s481_s14, %s477_s13 }
   0x7   : > { %p90_p1 = scmp.eq.s32.totalorder %s89_s20, 0  ;;  %p103_p2 = scmp.eq.s32.totalorder %s530_s16, 9 }
   0x8   : > { %p108_p3 = scmp.ne.s32.totalorder %s477_s13, %s473_s12  ;;  %p109_p4 = scmp.eq.s32.totalorder %s316_s17, 9 }
   0x9   : > { %s545_s21 = scalar_select %p90_p1, %s481_s14, %s92_s19  }
   0xa   : > { %p547_p5 = por %p103_p2, %p102_p0  ;;  %p551_p6 = por %p109_p4, %p108_p3 }
   0xb   : > { %p317_p7 = scmp.ge.s32.totalorder %s485_s15, 1  ;;  %p116_p8 = scmp.lt.s32.totalorder %s485_s15, 11 }
   0xc   : > { %p356_p9 = scmp.eq.s32.totalorder %s530_s16, 0  ;;  %s132_s27 = sshll.u32 %s652_s2, 4  ;;  %s133_s27 = int_to_ptr.vmem [resolvable:$true] %s132_s27 }
   0xd   : > { %p558_p10 = pnand %p317_p7, %p116_p8  ;;  %s404_s28 = scalar_lea.vmem %s133_s27, 16 }
   0xe   : > { %p405_p13 = scmp.ne.s32.totalorder %s133_s27, %s404_s28  ;;  %p412_p3 = scmp.lt.s32.totalorder %s133_s27, %s133_s27 }
   0xf   : > { %p348_p11 = pneg %p558_p10  ;;  %p413_p4 = scmp.lt.s32.totalorder %s404_s28, %s404_s28 }
  0x11   : > { %p349_p12 = pnand %p356_p9, %p348_p11  ;;  %p414_p7 = por %p413_p4, %p412_p3 }
  0x13   : > { %p406_p0 = pneg %p349_p12 }
  0x15   : > { %p407_p1 = pnand %p406_p0, %p405_p13 }
  0x17   : > { %p408_p2 = pneg %p407_p1 }
  0x19   : > { %p415_p8 = pnand %p414_p7, %p408_p2 }
  0x1b   : > { %418 = shalt.err (!%p415_p8)
}
  0x1c   : > { %s487_s29 = smov [#allocation2]   ;;  %153 = sbr.rel (%p558_p10) target bundleno = 88 (0x58), region = 32 }
  0x1d   : > { %351 = dma.vmem_to_smem (!%p349_p12), %s133_s27, 16, %s487_s29, [#allocation4]  }
  0x23   : > { %464 = dma.done.wait (%p356_p9), [#allocation4], 16  }
  0x24   : > { %466 = vsyncadd (%p356_p9), [#allocation4], 4294967280 }
  0x25   : > { %159 = sfence }
  0x26   : > { %p178_p11 = scmp.lt.s32.totalorder %s530_s16, 9  ;;  %s325_s8 = sshll.u32 %s530_s16, 1  ;;  %v198_v8 = vlaneseq  ;;  %v187_v20 = vld [vmem:[%s651_s1] ss:$2 sm:$0x3] }
  0x27   : > { %s185_s9 = sadd.s32 1, %s325_s8  ;;  %s184_s10 = sld [smem:[#allocation2 + %s325_s8]]  ;;  %v326_v21 = vld [vmem:[%s651_s1 + $0x1] ss:$2 sm:$0x3] }
  0x28   : > { %s179_s30 = scalar_select %p178_p11, %s530_s16, 9  ;;  %vm584_vm0 = vcmp.lt.s32.totalorder %v198_v8, 256 }
  0x29   : > { %s186_s11 = sld [smem:[#allocation2 + %s185_s9]]  ;;  %s175_s17 = sand.u32 1, %s477_s13  }
  0x2a   : > { %s340_s4 = sshll.u32 %s179_s30, 4  ;;  %s322_s19 = sshll.u32 %s175_s17, 3 }
  0x2b   : > { %s182_s7 = scalar_lea.vmem %s650_s0, %s340_s4  ;;  %s177_s20 = scalar_lea.vmem [#allocation5], %s322_s19 }
  0x2c   : > { %v190_v0 = vld [vmem:[%s182_s7] ss:$8 sm:$0x3]  ;;  %v328_v1 = vld [vmem:[%s182_s7 + $0x1] ss:$8 sm:$0x3] }
  0x2d   : > { %v327_v2 = vmul.f32 -1.442695, %v190_v0  ;;  %v329_v3 = vmul.f32 -1.442695, %v328_v1  ;;  %v218_v10 = vstv %s184_s10  ;;  %s341_s28 = sshll.u32 %s530_s16, 7  ;;  %s245_s29 = sshll.u32 %s177_s20, 4  ;;  %s604_s29 = int_to_ptr.vmem [resolvable:$true] %s245_s29 }
  0x2e   : > { %v331_v4 = vld [vmem:[%s182_s7 + $0x2] ss:$8 sm:$0x3]  ;;  %v333_v5 = vld [vmem:[%s182_s7 + $0x3] ss:$8 sm:$0x3]  ;;  %s602_s5 = scalar_lea.hbm %s653_s3, %s341_s28 }
  0x2f   : > { %392 = vpow2.f32 %v327_v2  ;;  %v216_v6 = vmul.f32 1.442695, %v331_v4  ;;  %v224_v7 = vmul.f32 1.442695, %v333_v5  ;;  %v226_v13 = vstv %s186_s11  ;;  %s231_s16 = scalar_lea.sflag [#allocation3], %s175_s17  ;;  %s419_s6 = scalar_lea.vmem %s604_s29, 128 }
  0x30   : > { %394 = vpow2.f32 %v329_v3  ;;  %p420_p9 = scmp.ne.s32.totalorder %s604_s29, %s419_s6  ;;  %s488_s7 = smov [#allocation5]  }
  0x31   : > { %396 = vpow2.f32 %v216_v6  ;;  %s423_s8 = sshll.u32 %s488_s7, 4  ;;  %s424_s8 = int_to_ptr.vmem [resolvable:$false] %s423_s8 }
  0x32   : > { %398 = vpow2.f32 %v224_v7  ;;  %p421_p10 = pnand %p420_p9, %p547_p5  ;;  %s425_s9 = scalar_lea.vmem %s424_s8, 256 }
  0x33   : > { %p426_p13 = scmp.lt.s32.totalorder %s604_s29, %s424_s8  ;;  %p427_p0 = scmp.lt.s32.totalorder %s425_s9, %s419_s6 }
  0x34   : > { %p422_p12 = pneg %p421_p10 }
  0x35   : > { %p428_p1 = por %p427_p0, %p426_p13 }
  0x37   : > { %p429_p2 = pnand %p428_p1, %p422_p12 }
  0x39   : > { %v393_v9 = vpop.eup %392 }
  0x3a   : > { %v395_v11 = vpop.eup %394  ;;  %v194_v12 = vadd.f32 1.0, %v393_v9 }
  0x3b   : > { %v397_v14 = vpop.eup %396  ;;  %v208_v16 = vadd.f32 1.0, %v395_v11 }
  0x3c   : > { %v399_v17 = vpop.eup %398  ;;  %400 = vrcp.f32 %v194_v12  ;;  %v219_v18 = vmul.f32 %v397_v14, %v218_v10 }
  0x3d   : > { %402 = vrcp.f32 %v208_v16  ;;  %v227_v19 = vmul.f32 %v399_v17, %v226_v13 }
  0x3e   : > { %332 = vst.msk [vmem:[%s177_s20 + $0x2] ss:$4 sm:$0x3] %vm584_vm0, %v219_v18 }
  0x3f   : > { %334 = vst.msk [vmem:[%s177_s20 + $0x3] ss:$4 sm:$0x3] %vm584_vm0, %v227_v19 }
  0x46   : > { %v401_v22 = vpop.eup %400 }
  0x47   : > { %v403_v23 = vpop.eup %402  ;;  %v197_v24 = vadd.f32 %v401_v22, %v187_v20 }
  0x48   : > { %v211_v25 = vadd.f32 %v403_v23, %v326_v21 }
  0x49   : > { %202 = vst.msk [vmem:[%s177_s20] ss:$4 sm:$0x3] %vm584_vm0, %v197_v24 }
  0x4a   : > { %330 = vst.msk [vmem:[%s177_s20 + $0x1] ss:$4 sm:$0x3] %vm584_vm0, %v211_v25 }
  0x4b   : > { %432 = shalt.err (!%p429_p2)
}
  0x4c   : > { %s433_s10 = scalar_lea.hbm %s602_s5, 128  ;;  %s437_s19 = scalar_lea.hbm %s653_s3, 1280 }
  0x4d   : > { %p434_p3 = scmp.ne.s32.totalorder %s602_s5, %s433_s10  ;;  %p438_p8 = scmp.lt.u32.totalorder %s602_s5, %s653_s3 }
  0x4e   : > { %p439_p11 = scmp.lt.u32.totalorder %s437_s19, %s433_s10  ;;  %p441_p10 = scmp.lt.u32.totalorder %s433_s10, %s602_s5 }
  0x4f   : > { %p435_p4 = pnand %p434_p3, %p547_p5 }
  0x50   : > { %p440_p9 = por %p439_p11, %p438_p8 }
  0x51   : > { %p436_p7 = pneg %p435_p4 }
  0x52   : > { %p442_p12 = por %p441_p10, %p440_p9 }
  0x54   : > { %p443_p13 = pnand %p442_p12, %p436_p7 }
  0x56   : > { %446 = shalt.err (!%p443_p13)
}
  0x57   : > { %346 = dma.vmem_to_hbm [thread:$0]  (%p547_p5), %s604_s29, 128, %s602_s5, %s231_s16  }
  0x58 PF: > { %p358_p0 = scmp.ge.s32.totalorder %s485_s15, 2  ;;  %s257_s25 = sand.u32 1, %s473_s12  }
  0x59   : > { %s258_s26 = scalar_lea.sflag [#allocation3], %s257_s25 }
  0x5a   : > { %p353_p1 = pnand %p358_p0, %p551_p6 }
  0x5c   : > { %468 = dma.done.wait (!%p353_p1), %s258_s26, 128  }
  0x5d   : > { %470 = vsyncadd (!%p353_p1), %s258_s26, 4294967168  ;;  %p14_p2 = scmp.ge.s32.totalorder %s534_s18, 12   ;;  %s659_s12 = smov %s477_s13 }
  0x5e   : > { %s660_s13 = smov %s481_s14  ;;  %s661_s14 = smov %s545_s21 }
  0x5f   : > { %s662_s15 = smov %s534_s18  ;;  %16 = sbr.rel (!%p14_p2) target bundleno = 4 (0x4), region = 79 }
  0x66   :  { %263 = vsyncpa [#allocation3], 1 }
  0x67   :  { %265 = vsyncpa [#allocation3 + $0x1], 1 }
  0x68   :  { %266 = vsyncpa [#allocation4], 1 }
  0x69   :  { %268 = vsyncpa [#allocation4 + $0x1], 1 }

</bundles_post_ra>
